<compile_context>
chip_gen: v7x
topology: tpu7x:2x2x1
jax: 0.10.0
libtpu: 0.0.40
codegen_flags: <defaults>
</compile_context>

<pallas_src>
import math

import jax
import jax.numpy as jnp
from jax import lax
from jax.experimental import pallas as pl
from jax.experimental.pallas import tpu as pltpu

LOG_2PI = math.log(2.0 * math.pi)
_MIB = 1024 * 1024


def _choose_tile(M, K, itemsize, target_bytes=2 * _MIB, max_tn=65536):
    """Lane tile sized by bytes/step for the 3 param streams + y; mult of 128."""
    if M < 128:
        return int(M)                      # single full-width (ragged-free) block
    bytes_per_lane = (3 * K + 1) * itemsize
    tn = (target_bytes // bytes_per_lane) // 128 * 128
    tn = max(128, min(int(tn), max_tn))
    return int(min(tn, (M // 128) * 128))  # never larger than the problem


def _vmem_bytes_estimate(K, tn):
    """Conservative VMEM footprint: double-buffered inputs + accumulators."""
    lane_tiles = pl.cdiv(tn, 128)
    tile_bytes = 8 * 128 * 4                           # native (8,128) f32 tile
    param_block = pl.cdiv(K, 8) * lane_tiles * tile_bytes
    row_block = lane_tiles * tile_bytes                # (1, tn) blocks / accs
    return 2 * (3 * param_block + row_block) + 3 * row_block


def make_gmm_loss(M, K, tn, n_splits, steps,
                  variance_regularization=0.0, weights_regularization=0.0,
                  weights_normalized=False, vmem_limit_bytes=None):
    """Builds a pallas_call returning per-core partial sums.

    Inputs (lane-dense): weights/means/sigmas (K, M), y_true (1, M).
    Output: (n_splits*8, 128) f32; rows {0,1,2} of each core's 8-row slab hold
    sum(logsumexp'), sum(sigma^-2), sum(w^2) broadcast across all lanes.
    """
    n_tiles = pl.cdiv(M, tn)
    use_var = variance_regularization != 0.0
    use_w = weights_regularization != 0.0

    def kernel(w_ref, mu_ref, sig_ref, y_ref, out_ref, lp_acc, var_acc, w_acc):
        c = pl.program_id(0)
        i = pl.program_id(1)

        @pl.when(i == 0)
        def _init():
            lp_acc[...] = jnp.zeros_like(lp_acc)
            if use_var:
                var_acc[...] = jnp.zeros_like(var_acc)
            if use_w:
                w_acc[...] = jnp.zeros_like(w_acc)

        # Upcast after load: bf16 inputs halve HBM traffic, math stays f32.
        w = w_ref[...].astype(jnp.float32)        # (K, tn)
        mu = mu_ref[...].astype(jnp.float32)      # (K, tn)
        sig = sig_ref[...].astype(jnp.float32)    # (K, tn)
        y = y_ref[...].astype(jnp.float32)        # (1, tn) -> broadcasts over K

        # One (exact) reciprocal reused for z, log(sigma) and sigma^-2.
        inv_sig = 1.0 / sig
        log_w = jnp.log(w)
        if not weights_normalized:
            # torch.distributions.Categorical(probs=w) normalizes probabilities.
            log_w = log_w - jnp.log(jnp.sum(w, axis=0, keepdims=True))
        z = (y - mu) * inv_sig
        # -0.5*log(2*pi) is constant across components; folded in the wrapper.
        logits = log_w - 0.5 * (z * z) + jnp.log(inv_sig)
        mmax = jnp.max(logits, axis=0, keepdims=True)
        lse = mmax + jnp.log(jnp.sum(jnp.exp(logits - mmax),
                                     axis=0, keepdims=True))        # (1, tn)

        s2 = jnp.sum(inv_sig * inv_sig, axis=0, keepdims=True) if use_var else None
        w2 = jnp.sum(w * w, axis=0, keepdims=True) if use_w else None

        # Global tile index; last real tile may be ragged, and remainder steps
        # of the core split (t >= n_tiles) contribute nothing.
        t = c * steps + i
        valid = M - t * tn

        @pl.when(valid >= tn)                    # full tile: no mask in hot loop
        def _full():
            lp_acc[...] += lse
            if use_var:
                var_acc[...] += s2
            if use_w:
                w_acc[...] += w2

        @pl.when(jnp.logical_and(valid > 0, valid < tn))      # ragged last tile
        def _tail():
            lane = lax.broadcasted_iota(jnp.int32, (1, tn), 1)
            keep = lane < valid
            lp_acc[...] += jnp.where(keep, lse, 0.0)
            if use_var:
                var_acc[...] += jnp.where(keep, s2, 0.0)
            if use_w:
                w_acc[...] += jnp.where(keep, w2, 0.0)

        @pl.when(i == pl.num_programs(1) - 1)
        def _finalize():
            lp_total = jnp.sum(lp_acc[...])
            var_total = jnp.sum(var_acc[...]) if use_var else 0.0
            w2_total = jnp.sum(w_acc[...]) if use_w else 0.0
            row = lax.broadcasted_iota(jnp.int32, (8, 128), 0)
            out_ref[...] = jnp.where(
                row == 0, lp_total,
                jnp.where(row == 1, var_total,
                          jnp.where(row == 2, w2_total, 0.0))).astype(jnp.float32)

    def lane_map(c, i):
        # Clamp so remainder steps of the core split issue in-bounds DMAs; their
        # contribution is discarded by the valid <= 0 case above.
        return (0, jnp.minimum(c * steps + i, n_tiles - 1))

    return pl.pallas_call(
        kernel,
        out_shape=jax.ShapeDtypeStruct((n_splits * 8, 128), jnp.float32),
        grid_spec=pltpu.PrefetchScalarGridSpec(
            num_scalar_prefetch=0,
            grid=(n_splits, steps),
            in_specs=[
                pl.BlockSpec((K, tn), lane_map),
                pl.BlockSpec((K, tn), lane_map),
                pl.BlockSpec((K, tn), lane_map),
                pl.BlockSpec((1, tn), lane_map),
            ],
            out_specs=pl.BlockSpec((8, 128), lambda c, i: (c, 0)),
            scratch_shapes=[
                pltpu.VMEM((1, tn), jnp.float32),   # sum of mixture log-probs
                pltpu.VMEM((1, tn), jnp.float32),   # sum of sigma^-2
                pltpu.VMEM((1, tn), jnp.float32),   # sum of weights^2
            ],
        ),
        compiler_params=pltpu.CompilerParams(
            dimension_semantics=("parallel", "arbitrary"),
            vmem_limit_bytes=vmem_limit_bytes),
    )


def gmm_loss(weights, means, sigmas, y_true,
             variance_regularization=0.0, weights_regularization=0.0,
             weights_normalized=False, tn=None, n_splits=2):
    """JAX wrapper reproducing GMMLoss.forward((weights, means, sigmas), y_true)."""
    B, S, K = weights.shape
    M = B * S

    if tn is None:
        tn = _choose_tile(M, K, weights.dtype.itemsize)
    assert tn == M or tn % 128 == 0, "lane tile must be a multiple of 128 (or == M)"
    assert tn <= M
    # Keep the working set comfortably under v7x's 64 MiB physical VMEM.
    while tn > 256 and _vmem_bytes_estimate(K, tn) > 40 * _MIB:
        tn = max(256, (tn // 2) // 128 * 128)
    vmem_limit = int(min(max(_vmem_bytes_estimate(K, tn) + 16 * _MIB, 32 * _MIB),
                         56 * _MIB))

    n_tiles = pl.cdiv(M, tn)
    n_splits = max(1, min(n_splits, n_tiles))      # 2-way TensorCore split (v7x)
    steps = pl.cdiv(n_tiles, n_splits)

    # Single fused reshape+transpose to the lane-dense (K, M) layout, kept in
    # the input dtype; no padded copies -- ragged tails are masked in-kernel.
    w_t = jnp.transpose(weights.reshape(M, K))
    m_t = jnp.transpose(means.reshape(M, K))
    s_t = jnp.transpose(sigmas.reshape(M, K))
    y_t = y_true.reshape(1, M)

    fn = make_gmm_loss(M, K, tn, n_splits, steps,
                       variance_regularization, weights_regularization,
                       weights_normalized, vmem_limit)
    parts = fn(w_t, m_t, s_t, y_t).reshape(n_splits, 8, 128)[:, :3, 0]
    sums = jnp.sum(parts, axis=0)                  # (lp_sum, var_sum, w2_sum)

    loss = 0.5 * LOG_2PI - sums[0] / float(M)      # fold hoisted 2*pi constant
    if variance_regularization != 0.0:
        loss = loss + variance_regularization * (sums[1] / float(M * K))
    if weights_regularization != 0.0:
        loss = loss + weights_regularization * jnp.sqrt(sums[2])
    return loss


def gmm_loss_reference(weights, means, sigmas, y_true,
                       variance_regularization=0.0, weights_regularization=0.0):
    """Pure-JAX reference mirroring the PyTorch module (for correctness checks)."""
    weights = weights.astype(jnp.float32)
    means = means.astype(jnp.float32)
    sigmas = sigmas.astype(jnp.float32)
    y_true = y_true.astype(jnp.float32)
    log_w = jnp.log(weights) - jnp.log(jnp.sum(weights, axis=-1, keepdims=True))
    y = y_true[..., None]
    comp_lp = (-0.5 * ((y - means) / sigmas) ** 2
               - jnp.log(sigmas) - 0.5 * LOG_2PI)
    lp = jax.scipy.special.logsumexp(log_w + comp_lp, axis=-1)
    nll = -jnp.mean(lp)
    var_loss = variance_regularization * jnp.mean(sigmas ** (-2))
    w_loss = weights_regularization * jnp.sqrt(jnp.sum(weights ** 2))
    return nll + var_loss + w_loss


def _make_inputs(key, B, S, K):
    kw, km, ks, ky = jax.random.split(key, 4)
    weights = jax.nn.softmax(jax.random.normal(kw, (B, S, K), jnp.float32), axis=-1)
    means = jax.random.normal(km, (B, S, K), jnp.float32)
    sigmas = 0.5 + jax.nn.softplus(jax.random.normal(ks, (B, S, K), jnp.float32))
    y_true = jax.random.normal(ky, (B, S), jnp.float32)
    return weights, means, sigmas, y_true


if __name__ == "__main__":
    key = jax.random.PRNGKey(0)
    k1, k2 = jax.random.split(key)

    # 1) Small shape implied by the forward: (batch, seq, n_components) params,
    #    (batch, seq) targets; single ragged tile, both regularizers on.
    B, S, K = 2, 8, 4
    var_reg, w_reg = 0.01, 0.001
    weights, means, sigmas, y_true = _make_inputs(k1, B, S, K)
    loss = gmm_loss(weights, means, sigmas, y_true,
                    variance_regularization=var_reg,
                    weights_regularization=w_reg)
    loss = jax.block_until_ready(loss)
    ref = gmm_loss_reference(weights, means, sigmas, y_true,
                             variance_regularization=var_reg,
                             weights_regularization=w_reg)
    assert jnp.allclose(loss, ref, rtol=1e-5, atol=2e-5), (loss, ref)

    # 2) Medium shape, regularizers off (build-time gating) + normalized-weights
    #    fast path (softmax weights), auto tile selection.
    B2, S2, K2 = 4, 200, 4
    w2, m2, s2, y2 = _make_inputs(k2, B2, S2, K2)
    loss2 = jax.block_until_ready(gmm_loss(w2, m2, s2, y2, weights_normalized=True))
    ref2 = gmm_loss_reference(w2, m2, s2, y2)
    assert jnp.allclose(loss2, ref2, rtol=1e-5, atol=2e-5), (loss2, ref2)

    # 3) Same data with a forced small tile: exercises multi-step accumulation,
    #    the 2-way core split, the clamped remainder step, the unmasked full-tile
    #    fast path and the ragged last tile.
    loss3 = gmm_loss(w2, m2, s2, y2,
                     variance_regularization=var_reg,
                     weights_regularization=w_reg,
                     tn=128, n_splits=2)
    loss3 = jax.block_until_ready(loss3)
    ref3 = gmm_loss_reference(w2, m2, s2, y2,
                              variance_regularization=var_reg,
                              weights_regularization=w_reg)
    assert jnp.allclose(loss3, ref3, rtol=1e-5, atol=2e-5), (loss3, ref3)

    print("KERNEL_OK")
</pallas_src>

<mosaic_0001>
module attributes {stable_mosaic.version = 11 : i64} {
  func.func @kernel(%arg0: i32, %arg1: i32, %arg2: memref<4x16xf32, #tpu.memory_space<vmem>>, %arg3: memref<4x16xf32, #tpu.memory_space<vmem>>, %arg4: memref<4x16xf32, #tpu.memory_space<vmem>>, %arg5: memref<1x16xf32, #tpu.memory_space<vmem>>, %arg6: memref<8x128xf32, #tpu.memory_space<vmem>>, %arg7: memref<1x16xf32, #tpu.memory_space<vmem>>, %arg8: memref<1x16xf32, #tpu.memory_space<vmem>>, %arg9: memref<1x16xf32, #tpu.memory_space<vmem>>) attributes {dimension_semantics = [#tpu.dimension_semantics<parallel>, #tpu.dimension_semantics<arbitrary>], iteration_bounds = array<i64: 1, 1>, scalar_prefetch = 0 : i64, scratch_operands = 3 : i64, tpu.core_type = #tpu.core_type<tc>, window_params = [{transform_indices = @transform_0, window_bounds = array<i64: 4, 16>}, {transform_indices = @transform_1, window_bounds = array<i64: 4, 16>}, {transform_indices = @transform_2, window_bounds = array<i64: 4, 16>}, {transform_indices = @transform_3, window_bounds = array<i64: 1, 16>}, {transform_indices = @transform_4, window_bounds = array<i64: 8, 128>}]} {
    %c0_i32 = arith.constant 0 : i32
    %0 = arith.cmpi eq, %arg1, %c0_i32 : i32
    %1 = arith.extui %0 : i1 to i32
    %c0_i32_0 = arith.constant 0 : i32
    %2 = arith.cmpi ne, %1, %c0_i32_0 : i32
    scf.if %2 {
      %cst_22 = arith.constant 0.000000e+00 : f32
      %54 = vector.broadcast %cst_22 : f32 to vector<1x16xf32>
      %c0_23 = arith.constant 0 : index
      %c0_24 = arith.constant 0 : index
      %55 = vector.load %arg7[%c0_23, %c0_24] : memref<1x16xf32, #tpu.memory_space<vmem>>, vector<1x16xf32>
      tpu.vector_store %arg7[%c0_23, %c0_24], %54 {strides = array<i32>} : memref<1x16xf32, #tpu.memory_space<vmem>>, vector<1x16xf32>,
      %cst_25 = arith.constant 0.000000e+00 : f32
      %56 = vector.broadcast %cst_25 : f32 to vector<1x16xf32>
      %c0_26 = arith.constant 0 : index
      %c0_27 = arith.constant 0 : index
      %57 = vector.load %arg8[%c0_26, %c0_27] : memref<1x16xf32, #tpu.memory_space<vmem>>, vector<1x16xf32>
      tpu.vector_store %arg8[%c0_26, %c0_27], %56 {strides = array<i32>} : memref<1x16xf32, #tpu.memory_space<vmem>>, vector<1x16xf32>,
      %cst_28 = arith.constant 0.000000e+00 : f32
      %58 = vector.broadcast %cst_28 : f32 to vector<1x16xf32>
      %c0_29 = arith.constant 0 : index
      %c0_30 = arith.constant 0 : index
      %59 = vector.load %arg9[%c0_29, %c0_30] : memref<1x16xf32, #tpu.memory_space<vmem>>, vector<1x16xf32>
      tpu.vector_store %arg9[%c0_29, %c0_30], %58 {strides = array<i32>} : memref<1x16xf32, #tpu.memory_space<vmem>>, vector<1x16xf32>,
    } else {
    }
    %c0 = arith.constant 0 : index
    %c0_1 = arith.constant 0 : index
    %3 = vector.load %arg2[%c0, %c0_1] : memref<4x16xf32, #tpu.memory_space<vmem>>, vector<4x16xf32>
    %c0_2 = arith.constant 0 : index
    %c0_3 = arith.constant 0 : index
    %4 = vector.load %arg3[%c0_2, %c0_3] : memref<4x16xf32, #tpu.memory_space<vmem>>, vector<4x16xf32>
    %c0_4 = arith.constant 0 : index
    %c0_5 = arith.constant 0 : index
    %5 = vector.load %arg4[%c0_4, %c0_5] : memref<4x16xf32, #tpu.memory_space<vmem>>, vector<4x16xf32>
    %c0_6 = arith.constant 0 : index
    %c0_7 = arith.constant 0 : index
    %6 = vector.load %arg5[%c0_6, %c0_7] : memref<1x16xf32, #tpu.memory_space<vmem>>, vector<1x16xf32>
    %cst = arith.constant 1.000000e+00 : f32
    %7 = vector.broadcast %cst : f32 to vector<4x16xf32>
    %8 = arith.divf %7, %5 : vector<4x16xf32>
    %9 = math.log %3 : vector<4x16xf32>
    %cst_8 = arith.constant dense<0.000000e+00> : vector<16xf32>
    %10 = vector.multi_reduction <add>, %3, %cst_8 [0] : vector<4x16xf32> to vector<16xf32>
    %11 = vector.shape_cast %10 : vector<16xf32> to vector<1x16xf32>
    %12 = math.log %11 : vector<1x16xf32>
    %13 = vector.broadcast %12 : vector<1x16xf32> to vector<4x16xf32>
    %14 = arith.subf %9, %13 : vector<4x16xf32>
    %15 = vector.broadcast %6 : vector<1x16xf32> to vector<4x16xf32>
    %16 = arith.subf %15, %4 : vector<4x16xf32>
    %17 = arith.mulf %16, %8 : vector<4x16xf32>
    %18 = arith.mulf %17, %17 : vector<4x16xf32>
    %cst_9 = arith.constant 5.000000e-01 : f32
    %19 = vector.broadcast %cst_9 : f32 to vector<4x16xf32>
    %20 = arith.mulf %19, %18 : vector<4x16xf32>
    %21 = arith.subf %14, %20 : vector<4x16xf32>
    %22 = math.log %8 : vector<4x16xf32>
    %23 = arith.addf %21, %22 : vector<4x16xf32>
    %cst_10 = arith.constant dense<0xFF800000> : vector<16xf32>
    %24 = vector.multi_reduction <maximumf>, %23, %cst_10 [0] : vector<4x16xf32> to vector<16xf32>
    %25 = vector.shape_cast %24 : vector<16xf32> to vector<1x16xf32>
    %26 = vector.broadcast %25 : vector<1x16xf32> to vector<4x16xf32>
    %27 = arith.subf %23, %26 : vector<4x16xf32>
    %28 = math.exp %27 : vector<4x16xf32>
    %cst_11 = arith.constant dense<0.000000e+00> : vector<16xf32>
    %29 = vector.multi_reduction <add>, %28, %cst_11 [0] : vector<4x16xf32> to vector<16xf32>
    %30 = vector.shape_cast %29 : vector<16xf32> to vector<1x16xf32>
    %31 = math.log %30 : vector<1x16xf32>
    %32 = arith.addf %25, %31 : vector<1x16xf32>
    %33 = arith.mulf %8, %8 : vector<4x16xf32>
    %cst_12 = arith.constant dense<0.000000e+00> : vector<16xf32>
    %34 = vector.multi_reduction <add>, %33, %cst_12 [0] : vector<4x16xf32> to vector<16xf32>
    %35 = vector.shape_cast %34 : vector<16xf32> to vector<1x16xf32>
    %36 = arith.mulf %3, %3 : vector<4x16xf32>
    %cst_13 = arith.constant dense<0.000000e+00> : vector<16xf32>
    %37 = vector.multi_reduction <add>, %36, %cst_13 [0] : vector<4x16xf32> to vector<16xf32>
    %38 = vector.shape_cast %37 : vector<16xf32> to vector<1x16xf32>
    %c1_i32 = arith.constant 1 : i32
    %39 = arith.muli %arg0, %c1_i32 : i32
    %40 = arith.addi %39, %arg1 : i32
    %c16_i32 = arith.constant 16 : i32
    %41 = arith.muli %40, %c16_i32 : i32
    %c16_i32_14 = arith.constant 16 : i32
    %42 = arith.subi %c16_i32_14, %41 : i32
    %c16_i32_15 = arith.constant 16 : i32
    %43 = arith.cmpi sge, %42, %c16_i32_15 : i32
    %44 = arith.extui %43 : i1 to i32
    %c0_i32_16 = arith.constant 0 : i32
    %45 = arith.cmpi ne, %44, %c0_i32_16 : i32
    scf.if %45 {
      %c0_22 = arith.constant 0 : index
      %c0_23 = arith.constant 0 : index
      %54 = vector.load %arg7[%c0_22, %c0_23] : memref<1x16xf32, #tpu.memory_space<vmem>>, vector<1x16xf32>
      %55 = arith.addf %54, %32 : vector<1x16xf32>
      %c0_24 = arith.constant 0 : index
      %c0_25 = arith.constant 0 : index
      %56 = vector.load %arg7[%c0_24, %c0_25] : memref<1x16xf32, #tpu.memory_space<vmem>>, vector<1x16xf32>
      tpu.vector_store %arg7[%c0_24, %c0_25], %55 {strides = array<i32>} : memref<1x16xf32, #tpu.memory_space<vmem>>, vector<1x16xf32>,
      %c0_26 = arith.constant 0 : index
      %c0_27 = arith.constant 0 : index
      %57 = vector.load %arg8[%c0_26, %c0_27] : memref<1x16xf32, #tpu.memory_space<vmem>>, vector<1x16xf32>
      %58 = arith.addf %57, %35 : vector<1x16xf32>
      %c0_28 = arith.constant 0 : index
      %c0_29 = arith.constant 0 : index
      %59 = vector.load %arg8[%c0_28, %c0_29] : memref<1x16xf32, #tpu.memory_space<vmem>>, vector<1x16xf32>
      tpu.vector_store %arg8[%c0_28, %c0_29], %58 {strides = array<i32>} : memref<1x16xf32, #tpu.memory_space<vmem>>, vector<1x16xf32>,
      %c0_30 = arith.constant 0 : index
      %c0_31 = arith.constant 0 : index
      %60 = vector.load %arg9[%c0_30, %c0_31] : memref<1x16xf32, #tpu.memory_space<vmem>>, vector<1x16xf32>
      %61 = arith.addf %60, %38 : vector<1x16xf32>
      %c0_32 = arith.constant 0 : index
      %c0_33 = arith.constant 0 : index
      %62 = vector.load %arg9[%c0_32, %c0_33] : memref<1x16xf32, #tpu.memory_space<vmem>>, vector<1x16xf32>
      tpu.vector_store %arg9[%c0_32, %c0_33], %61 {strides = array<i32>} : memref<1x16xf32, #tpu.memory_space<vmem>>, vector<1x16xf32>,
    } else {
    }
    %c0_i32_17 = arith.constant 0 : i32
    %46 = arith.cmpi sgt, %42, %c0_i32_17 : i32
    %c16_i32_18 = arith.constant 16 : i32
    %47 = arith.cmpi slt, %42, %c16_i32_18 : i32
    %48 = arith.andi %46, %47 : i1
    %49 = arith.extui %48 : i1 to i32
    %c0_i32_19 = arith.constant 0 : i32
    %50 = arith.cmpi ne, %49, %c0_i32_19 : i32
    scf.if %50 {
      %54 = tpu.iota {dimensions = array<i32: 1>} : vector<1x16xi32>
      %55 = vector.broadcast %42 : i32 to vector<1x16xi32>
      %56 = arith.cmpi slt, %54, %55 : vector<1x16xi32>
      %c0_22 = arith.constant 0 : index
      %c0_23 = arith.constant 0 : index
      %57 = vector.load %arg7[%c0_22, %c0_23] : memref<1x16xf32, #tpu.memory_space<vmem>>, vector<1x16xf32>
      %cst_24 = arith.constant 0.000000e+00 : f32
      %58 = vector.broadcast %cst_24 : f32 to vector<1x16xf32>
      %59 = arith.select %56, %32, %58 : vector<1x16xi1>, vector<1x16xf32>
      %60 = arith.addf %57, %59 : vector<1x16xf32>
      %c0_25 = arith.constant 0 : index
      %c0_26 = arith.constant 0 : index
      %61 = vector.load %arg7[%c0_25, %c0_26] : memref<1x16xf32, #tpu.memory_space<vmem>>, vector<1x16xf32>
      tpu.vector_store %arg7[%c0_25, %c0_26], %60 {strides = array<i32>} : memref<1x16xf32, #tpu.memory_space<vmem>>, vector<1x16xf32>,
      %c0_27 = arith.constant 0 : index
      %c0_28 = arith.constant 0 : index
      %62 = vector.load %arg8[%c0_27, %c0_28] : memref<1x16xf32, #tpu.memory_space<vmem>>, vector<1x16xf32>
      %cst_29 = arith.constant 0.000000e+00 : f32
      %63 = vector.broadcast %cst_29 : f32 to vector<1x16xf32>
      %64 = arith.select %56, %35, %63 : vector<1x16xi1>, vector<1x16xf32>
      %65 = arith.addf %62, %64 : vector<1x16xf32>
      %c0_30 = arith.constant 0 : index
      %c0_31 = arith.constant 0 : index
      %66 = vector.load %arg8[%c0_30, %c0_31] : memref<1x16xf32, #tpu.memory_space<vmem>>, vector<1x16xf32>
      tpu.vector_store %arg8[%c0_30, %c0_31], %65 {strides = array<i32>} : memref<1x16xf32, #tpu.memory_space<vmem>>, vector<1x16xf32>,
      %c0_32 = arith.constant 0 : index
      %c0_33 = arith.constant 0 : index
      %67 = vector.load %arg9[%c0_32, %c0_33] : memref<1x16xf32, #tpu.memory_space<vmem>>, vector<1x16xf32>
      %cst_34 = arith.constant 0.000000e+00 : f32
      %68 = vector.broadcast %cst_34 : f32 to vector<1x16xf32>
      %69 = arith.select %56, %38, %68 : vector<1x16xi1>, vector<1x16xf32>
      %70 = arith.addf %67, %69 : vector<1x16xf32>
      %c0_35 = arith.constant 0 : index
      %c0_36 = arith.constant 0 : index
      %71 = vector.load %arg9[%c0_35, %c0_36] : memref<1x16xf32, #tpu.memory_space<vmem>>, vector<1x16xf32>
      tpu.vector_store %arg9[%c0_35, %c0_36], %70 {strides = array<i32>} : memref<1x16xf32, #tpu.memory_space<vmem>>, vector<1x16xf32>,
    } else {
    }
    %c0_i32_20 = arith.constant 0 : i32
    %51 = arith.cmpi eq, %arg1, %c0_i32_20 : i32
    %52 = arith.extui %51 : i1 to i32
    %c0_i32_21 = arith.constant 0 : i32
    %53 = arith.cmpi ne, %52, %c0_i32_21 : i32
    scf.if %53 {
      %c0_22 = arith.constant 0 : index
      %c0_23 = arith.constant 0 : index
      %54 = vector.load %arg7[%c0_22, %c0_23] : memref<1x16xf32, #tpu.memory_space<vmem>>, vector<1x16xf32>
      %55 = vector.shape_cast %54 : vector<1x16xf32> to vector<1x1x16xf32>
      %cst_24 = arith.constant dense<0.000000e+00> : vector<1xf32>
      %56 = vector.multi_reduction <add>, %55, %cst_24 [1, 2] : vector<1x1x16xf32> to vector<1xf32>
      %57 = vector.shape_cast %56 : vector<1xf32> to vector<1x1x1xf32>
      %58 = vector.extract %57[0, 0, 0] : f32 from vector<1x1x1xf32>
      %c0_25 = arith.constant 0 : index
      %c0_26 = arith.constant 0 : index
      %59 = vector.load %arg8[%c0_25, %c0_26] : memref<1x16xf32, #tpu.memory_space<vmem>>, vector<1x16xf32>
      %60 = vector.shape_cast %59 : vector<1x16xf32> to vector<1x1x16xf32>
      %cst_27 = arith.constant dense<0.000000e+00> : vector<1xf32>
      %61 = vector.multi_reduction <add>, %60, %cst_27 [1, 2] : vector<1x1x16xf32> to vector<1xf32>
      %62 = vector.shape_cast %61 : vector<1xf32> to vector<1x1x1xf32>
      %63 = vector.extract %62[0, 0, 0] : f32 from vector<1x1x1xf32>
      %c0_28 = arith.constant 0 : index
      %c0_29 = arith.constant 0 : index
      %64 = vector.load %arg9[%c0_28, %c0_29] : memref<1x16xf32, #tpu.memory_space<vmem>>, vector<1x16xf32>
      %65 = vector.shape_cast %64 : vector<1x16xf32> to vector<1x1x16xf32>
      %cst_30 = arith.constant dense<0.000000e+00> : vector<1xf32>
      %66 = vector.multi_reduction <add>, %65, %cst_30 [1, 2] : vector<1x1x16xf32> to vector<1xf32>
      %67 = vector.shape_cast %66 : vector<1xf32> to vector<1x1x1xf32>
      %68 = vector.extract %67[0, 0, 0] : f32 from vector<1x1x1xf32>
      %69 = tpu.iota {dimensions = array<i32: 0>} : vector<8x128xi32>
      %c0_i32_31 = arith.constant 0 : i32
      %70 = vector.broadcast %c0_i32_31 : i32 to vector<8x128xi32>
      %71 = arith.cmpi eq, %69, %70 : vector<8x128xi32>
      %c1_i32_32 = arith.constant 1 : i32
      %72 = vector.broadcast %c1_i32_32 : i32 to vector<8x128xi32>
      %73 = arith.cmpi eq, %69, %72 : vector<8x128xi32>
      %c2_i32 = arith.constant 2 : i32
      %74 = vector.broadcast %c2_i32 : i32 to vector<8x128xi32>
      %75 = arith.cmpi eq, %69, %74 : vector<8x128xi32>
      %cst_33 = arith.constant 0.000000e+00 : f32
      %76 = vector.broadcast %68 : f32 to vector<8x128xf32>
      %77 = vector.broadcast %cst_33 : f32 to vector<8x128xf32>
      %78 = arith.select %75, %76, %77 : vector<8x128xi1>, vector<8x128xf32>
      %79 = vector.broadcast %63 : f32 to vector<8x128xf32>
      %80 = arith.select %73, %79, %78 : vector<8x128xi1>, vector<8x128xf32>
      %81 = vector.broadcast %58 : f32 to vector<8x128xf32>
      %82 = arith.select %71, %81, %80 : vector<8x128xi1>, vector<8x128xf32>
      %c0_34 = arith.constant 0 : index
      %c0_35 = arith.constant 0 : index
      %83 = vector.load %arg6[%c0_34, %c0_35] : memref<8x128xf32, #tpu.memory_space<vmem>>, vector<8x128xf32>
      tpu.vector_store %arg6[%c0_34, %c0_35], %82 {strides = array<i32>} : memref<8x128xf32, #tpu.memory_space<vmem>>, vector<8x128xf32>,
    } else {
    }
    return
  }
  func.func @transform_0(%arg0: i32, %arg1: i32) -> (i32, i32) {
    %c1_i32 = arith.constant 1 : i32
    %0 = arith.muli %arg0, %c1_i32 : i32
    %1 = arith.addi %0, %arg1 : i32
    %c0_i32 = arith.constant 0 : i32
    %2 = arith.minsi %1, %c0_i32 : i32
    %c0_i32_0 = arith.constant 0 : i32
    %c0_i32_1 = arith.constant 0 : i32
    return %c0_i32_0, %2 : i32, i32
  }
  func.func @transform_1(%arg0: i32, %arg1: i32) -> (i32, i32) {
    %c1_i32 = arith.constant 1 : i32
    %0 = arith.muli %arg0, %c1_i32 : i32
    %1 = arith.addi %0, %arg1 : i32
    %c0_i32 = arith.constant 0 : i32
    %2 = arith.minsi %1, %c0_i32 : i32
    %c0_i32_0 = arith.constant 0 : i32
    %c0_i32_1 = arith.constant 0 : i32
    return %c0_i32_0, %2 : i32, i32
  }
  func.func @transform_2(%arg0: i32, %arg1: i32) -> (i32, i32) {
    %c1_i32 = arith.constant 1 : i32
    %0 = arith.muli %arg0, %c1_i32 : i32
    %1 = arith.addi %0, %arg1 : i32
    %c0_i32 = arith.constant 0 : i32
    %2 = arith.minsi %1, %c0_i32 : i32
    %c0_i32_0 = arith.constant 0 : i32
    %c0_i32_1 = arith.constant 0 : i32
    return %c0_i32_0, %2 : i32, i32
  }
  func.func @transform_3(%arg0: i32, %arg1: i32) -> (i32, i32) {
    %c1_i32 = arith.constant 1 : i32
    %0 = arith.muli %arg0, %c1_i32 : i32
    %1 = arith.addi %0, %arg1 : i32
    %c0_i32 = arith.constant 0 : i32
    %2 = arith.minsi %1, %c0_i32 : i32
    %c0_i32_0 = arith.constant 0 : i32
    %c0_i32_1 = arith.constant 0 : i32
    return %c0_i32_0, %2 : i32, i32
  }
  func.func @transform_4(%arg0: i32, %arg1: i32) -> (i32, i32) {
    %c0_i32 = arith.constant 0 : i32
    %c0_i32_0 = arith.constant 0 : i32
    return %arg0, %c0_i32 : i32, i32
  }
}

</mosaic_0001>

<bundles_post_ra>
// kernel: tpu_custom_call.1
= control target key start
LH: loop header
LB: loop body
LE: loop exit
PB: predicated region body
PF: predicated region fallthrough
CT: control target
= control target key end

     0   :  { %9 = vsyncpa [#allocation6], 0  ;;  %s484_s0 = inlined_call_operand.hbm [shape: f32[4,16], index: 0, kind: input, shape index: {}]   ;;  %s485_s1 = inlined_call_operand.hbm [shape: f32[4,16], index: 1, kind: input, shape index: {}]   ;;  %s486_s2 = inlined_call_operand.vmem [shape: f32[4,16], index: 2, kind: input, shape index: {}]   ;;  %s487_s3 = inlined_call_operand.vmem [shape: f32[1,16], index: 3, kind: input, shape index: {}]   ;;  %s488_s4 = inlined_call_operand.hbm [shape: f32[8,128], index: 4, kind: output, shape index: {}]  }
   0x1   :  { %10 = vsyncpa [#allocation9], 0 }
   0x2   :  { %11 = vsyncpa [#allocation7], 0  ;;  %s399_s15 = smov [#allocation5]   ;;  %s400_s17 = smov [#allocation8]  }
   0x3   :  { %s23_s16 = sshll.u32 %s399_s15, 4  ;;  %s38_s18 = sshll.u32 %s400_s17, 4  ;;  %s24_s16 = int_to_ptr.vmem [resolvable:$true] %s23_s16  ;;  %s39_s18 = int_to_ptr.vmem [resolvable:$true] %s38_s18 }
   0x4   :  { %s327_s21 = scalar_lea.hbm %s484_s0, 64 }
   0x5   :  { %p328_p0 = scmp.ne.s32.totalorder %s484_s0, %s327_s21  ;;  %p331_p1 = scmp.lt.u32.totalorder %s327_s21, %s484_s0 }
   0x7   :  { %p333_p2 = pnand %p331_p1, %p328_p0 }
   0x9   :  { %336 = shalt.err (!%p333_p2)
}
   0xa   :  { %s337_s26 = scalar_lea.vmem %s24_s16, 64  ;;  %p342_p4 = scmp.lt.s32.totalorder %s24_s16, %s24_s16 }
   0xb   :  { %p338_p3 = scmp.ne.s32.totalorder %s24_s16, %s337_s26  ;;  %p343_p5 = scmp.lt.s32.totalorder %s337_s26, %s337_s26 }
   0xd   :  { %p344_p6 = por %p343_p5, %p342_p4 }
   0xf   :  { %p345_p7 = pnand %p344_p6, %p338_p3 }
  0x11   :  { %348 = shalt.err (!%p345_p7)
}
  0x12   :  { %26 = dma.hbm_to_vmem [thread:$0]  %s484_s0, 64, %s24_s16, [#allocation6]  }
  0x13   :  { %s349_s5 = scalar_lea.hbm %s485_s1, 64 }
  0x14   :  { %p350_p8 = scmp.ne.s32.totalorder %s485_s1, %s349_s5  ;;  %p353_p9 = scmp.lt.u32.totalorder %s349_s5, %s485_s1 }
  0x16   :  { %p355_p10 = pnand %p353_p9, %p350_p8 }
  0x18   :  { %358 = shalt.err (!%p355_p10)
}
  0x19   :  { %s359_s10 = scalar_lea.vmem %s39_s18, 64  ;;  %p364_p12 = scmp.lt.s32.totalorder %s39_s18, %s39_s18 }
  0x1a   :  { %p360_p11 = scmp.ne.s32.totalorder %s39_s18, %s359_s10  ;;  %p365_p13 = scmp.lt.s32.totalorder %s359_s10, %s359_s10 }
  0x1c   :  { %p366_p0 = por %p365_p13, %p364_p12 }
  0x1e   :  { %p367_p1 = pnand %p366_p0, %p360_p11 }
  0x20   :  { %370 = shalt.err (!%p367_p1)
}
  0x21   :  { %41 = dma.hbm_to_vmem [thread:$0]  %s485_s1, 64, %s39_s18, [#allocation9]  }
  0x22   :  { %393 = dma.done.wait [#allocation6], 64  }
  0x23   :  { %394 = vsyncadd [#allocation6], 4294967232 }
  0x24   :  { %395 = dma.done.wait [#allocation9], 64  }
  0x25   :  { %396 = vsyncadd [#allocation9], 4294967232  ;;  %vm113_vm0 = vcmask 122880   ;;  %v401_v0 = vmov 0.0   ;;  %vm125_vm1 = vcmask 125952   ;;  %s402_s16 = smov [#allocation10]  }
  0x26   :  { %116 = vst.msk [vmem:[#allocation4] sm:$0x1] %vm113_vm0, %v401_v0  ;;  %114 = vst.msk [vmem:[#allocation2] sm:$0x1] %vm113_vm0, %v401_v0  ;;  %v117_v1 = vld [vmem:[#allocation5] sm:$0xf] }
  0x27   :  { %115 = vst.msk [vmem:[#allocation3] sm:$0x1] %vm113_vm0, %v401_v0  ;;  %v119_v2 = vld [vmem:[%s486_s2] sm:$0xf]  ;;  %v126_v3 = vsel %vm125_vm1, %v117_v1, 0.0  ;;  %v178_v4 = vmul.f32 %v117_v1, %v117_v1  ;;  %s281_s17 = sshll.u32 %s402_s16, 4  ;;  %s282_s17 = int_to_ptr.vmem [resolvable:$true] %s281_s17 }
  0x28   :  { %v127_v5 = vrot.slane %v126_v3, 4  ;;  %315 = vrcp.f32 %v119_v2  ;;  %v118_v15 = vld [vmem:[#allocation8] sm:$0xf]  ;;  %v304_v16 = vld [vmem:[%s487_s3] ss:$0 sm:$0xff]  ;;  %s371_s18 = scalar_lea.vmem %s282_s17, 128  ;;  %p376_p3 = scmp.lt.s32.totalorder %s282_s17, %s282_s17 }
  0x29   :  { %v179_v6 = vsel %vm125_vm1, %v178_v4, 0.0  ;;  %317 = vlog2.f32 %v117_v1  ;;  %v142_v21 = vsub.f32 %v304_v16, %v118_v15  ;;  %p372_p2 = scmp.ne.s32.totalorder %s282_s17, %s371_s18  ;;  %p377_p4 = scmp.lt.s32.totalorder %s371_s18, %s371_s18 }
  0x2a   :  { %v128_v7 = vadd.f32 %v127_v5, %v126_v3  ;;  %v180_v8 = vrot.slane %v179_v6, 4 }
  0x2b   :  { %p378_p5 = por %p377_p4, %p376_p3 }
  0x2c   :  { %v129_v9 = vrot.slane %v128_v7, 2  ;;  %v181_v10 = vadd.f32 %v180_v8, %v179_v6 }
  0x2d   :  { %v200_v20 = vld [vmem:[#allocation4] sm:$0x1]  ;;  %v193_v3 = vld [vmem:[#allocation2] sm:$0x1]  ;;  %p379_p6 = pnand %p378_p5, %p372_p2 }
  0x2e   :  { %v130_v11 = vadd.f32 %v129_v9, %v128_v7  ;;  %v182_v12 = vrot.slane %v181_v10, 2  ;;  %v197_v37 = vld [vmem:[#allocation3] sm:$0x1] }
  0x30   :  { %v131_v13 = vrot.slane %v130_v11, 1  ;;  %v183_v14 = vadd.f32 %v182_v12, %v181_v10 }
  0x32   :  { %v316_v17 = vpop.eup %315  ;;  %v184_v18 = vrot.slane %v183_v14, 1  ;;  %v132_v19 = vadd.f32 %v131_v13, %v130_v11 }
  0x33   :  { %319 = vlog2.f32 %v316_v17  ;;  %v170_v22 = vmul.f32 %v316_v17, %v316_v17  ;;  %v143_v27 = vmul.f32 %v316_v17, %v142_v21  ;;  %v318_v29 = vpop.eup %317 }
  0x34   :  { %v185_v23 = vadd.f32 %v184_v18, %v183_v14  ;;  %321 = vlog2.f32 %v132_v19  ;;  %v124_v34 = vmul.f32 0.6931472, %v318_v29 }
  0x35   :  { %v171_v24 = vsel %vm125_vm1, %v170_v22, 0.0  ;;  %v144_v31 = vmul.f32 %v143_v27, %v143_v27 }
  0x36   :  { %v201_v25 = vadd.f32 %v200_v20, %v185_v23  ;;  %v172_v26 = vrot.slane %v171_v24, 4 }
  0x37   :  { %v145_v40 = vmul.f32 0.5, %v144_v31  ;;  %v263_v31 = vlaneseq }
  0x38   :  { %202 = vst.msk [vmem:[#allocation4] sm:$0x1] %vm113_vm0, %v201_v25  ;;  %v173_v28 = vadd.f32 %v172_v26, %v171_v24 }
  0x3a   :  { %v174_v30 = vrot.slane %v173_v28, 2 }
  0x3c   :  { %v175_v32 = vadd.f32 %v174_v30, %v173_v28 }
  0x3d   :  { %v320_v33 = vpop.eup %319 }
  0x3e   :  { %v322_v35 = vpop.eup %321  ;;  %v176_v36 = vrot.slane %v175_v32, 1  ;;  %v148_v44 = vmul.f32 0.6931472, %v320_v33 }
  0x3f   :  { %v252_v38 = vld [vmem:[#allocation4] sm:$0x1]  ;;  %v134_v39 = vmul.f32 0.6931472, %v322_v35 }
  0x40   :  { %v253_v41 = vsel %vm113_vm0, %v252_v38, 0.0  ;;  %v177_v42 = vadd.f32 %v176_v36, %v175_v32  ;;  %v264_v32 = vshrl.u32 %v263_v31, 7 }
  0x41   :  { %254 = vadd.xlane.f32.xlu1 %v253_v41  ;;  %v135_v43 = vsub.f32 %v124_v34, %v134_v39 }
  0x42   :  { %v198_v45 = vadd.f32 %v197_v37, %v177_v42  ;;  %vm267_vm2 = vcmp.eq.s32.totalorder %v264_v32, 2  ;;  %vm266_vm3 = vcmp.eq.s32.totalorder %v264_v32, 1  ;;  %vm265_vm4 = vcmp.eq.s32.totalorder %v264_v32, 0 }
  0x43   :  { %v146_v46 = vsub.f32 %v135_v43, %v145_v40 }
  0x44   :  { %199 = vst.msk [vmem:[#allocation3] sm:$0x1] %vm113_vm0, %v198_v45 }
  0x45   :  { %v149_v47 = vadd.f32 %v148_v44, %v146_v46 }
  0x47   :  { %v150_v48 = vsel %vm125_vm1, %v149_v47, -inf }
  0x48   :  { %v151_v49 = vrot.slane %v150_v48, 4 }
  0x4a   :  { %v152_v50 = vmax.f32 %v150_v48, %v151_v49 }
  0x4b   :  { %v241_v7 = vld [vmem:[#allocation3] sm:$0x1] }
  0x4c   :  { %v153_v51 = vrot.slane %v152_v50, 2  ;;  %v242_v9 = vsel %vm113_vm0, %v241_v7, 0.0 }
  0x4e   :  { %v154_v52 = vmax.f32 %v152_v50, %v153_v51 }
  0x50   :  { %v155_v53 = vrot.slane %v154_v52, 1 }
  0x52   :  { %v156_v54 = vmax.f32 %v154_v52, %v155_v53 }
  0x54   :  { %v157_v55 = vsub.f32 %v149_v47, %v156_v54 }
  0x56   :  { %v158_v56 = vmul.f32 1.442695, %v157_v55 }
  0x58   :  { %323 = vpow2.f32 %v158_v56 }
  0x62   :  { %v324_v57 = vpop.eup %323 }
  0x63   :  { %v160_v58 = vsel %vm125_vm1, %v324_v57, 0.0 }
  0x64   :  { %v161_v59 = vrot.slane %v160_v58, 4 }
  0x66   :  { %v162_v60 = vadd.f32 %v161_v59, %v160_v58 }
  0x68   :  { %v163_v61 = vrot.slane %v162_v60, 2 }
  0x6a   :  { %v164_v62 = vadd.f32 %v163_v61, %v162_v60 }
  0x6c   :  { %v165_v63 = vrot.slane %v164_v62, 1 }
  0x6e   :  { %v166_v0 = vadd.f32 %v165_v63, %v164_v62 }
  0x70   :  { %325 = vlog2.f32 %v166_v0 }
  0x7a   :  { %v326_v1 = vpop.eup %325 }
  0x7b   :  { %v168_v2 = vmul.f32 0.6931472, %v326_v1 }
  0x7d   :  { %v169_v4 = vadd.f32 %v168_v2, %v156_v54 }
  0x7f   :  { %v194_v5 = vadd.f32 %v193_v3, %v169_v4 }
  0x81   :  { %196 = vst.msk [vmem:[#allocation2] sm:$0x1] %vm113_vm0, %v194_v5 }
  0x88   :  { %v229_v6 = vld [vmem:[#allocation2] sm:$0x1] }
  0x89   :  { %v231_v8 = vsel %vm113_vm0, %v229_v6, 0.0 }
  0x8a   :  { %232 = vadd.xlane.f32.xlu0 %v231_v8 }
  0x8e   :  { %243 = vadd.xlane.f32.xlu0 %v242_v9 }
  0xce   :  { %v255_v10 = vpop.xlane.xlu1 %254 }
  0xcf   :  { %v256_v11 = vrot.slane %v255_v10, 4 }
  0xd1   :  { %v257_v12 = vadd.f32 %v256_v11, %v255_v10 }
  0xd3   :  { %v258_v16 = vrot.slane %v257_v12, 2 }
  0xd5   :  { %v259_v22 = vadd.f32 %v258_v16, %v257_v12 }
  0xd7   :  { %v260_v27 = vrot.slane %v259_v22, 1 }
  0xd9   :  { %v261_v30 = vadd.f32 %v260_v27, %v259_v22 }
 0x117   :  { %v233_v13 = vpop.xlane.xlu0 %232 }
 0x118   :  { %v234_v14 = vrot.slane %v233_v13, 4 }
 0x11a   :  { %v235_v15 = vadd.f32 %v234_v14, %v233_v13 }
 0x11b   :  { %v244_v17 = vpop.xlane.xlu0 %243 }
 0x11c   :  { %v236_v18 = vrot.slane %v235_v15, 2  ;;  %v245_v19 = vrot.slane %v244_v17, 4 }
 0x11e   :  { %v246_v20 = vadd.f32 %v245_v19, %v244_v17  ;;  %v237_v21 = vadd.f32 %v236_v18, %v235_v15 }
 0x120   :  { %v247_v23 = vrot.slane %v246_v20, 2  ;;  %v238_v24 = vrot.slane %v237_v21, 1 }
 0x122   :  { %v248_v25 = vadd.f32 %v247_v23, %v246_v20  ;;  %v239_v26 = vadd.f32 %v238_v24, %v237_v21 }
 0x124   :  { %305 = vpush %v239_v26  ;;  %v249_v28 = vrot.slane %v248_v25, 1 }
 0x126   :  { %v250_v29 = vadd.f32 %v249_v28, %v248_v25 }
 0x128   :  { %307 = vpush %v250_v29 }
 0x129   :  { %309 = vpush %v261_v30 }
 0x155   :  { %s306_s2 = spop %305 }
 0x156   :  { %v272_v36 = vstv %s306_s2 }
 0x159   :  { %s308_s3 = spop %307 }
 0x15a   :  { %v270_v33 = vstv %s308_s3  ;;  %s310_s15 = spop %309 }
 0x15b   :  { %v268_v34 = vstv %s310_s15 }
 0x15c   :  { %v269_v35 = vsel %vm267_vm2, %v268_v34, 0.0 }
 0x15d   :  { %v271_v37 = vsel %vm266_vm3, %v270_v33, %v269_v35 }
 0x15e   :  { %v273_v38 = vsel %vm265_vm4, %v272_v36, %v271_v37 }
 0x15f   :  { %274 = vst [vmem:[#allocation10] sm:$0xff] %v273_v38 }
 0x160   :  { %382 = shalt.err (!%p379_p6)
}
 0x161   :  { %s383_s21 = scalar_lea.hbm %s488_s4, 128 }
 0x162   :  { %p384_p7 = scmp.ne.s32.totalorder %s488_s4, %s383_s21  ;;  %p387_p8 = scmp.lt.u32.totalorder %s383_s21, %s488_s4 }
 0x164   :  { %p389_p9 = pnand %p387_p8, %p384_p7 }
 0x166   :  { %392 = shalt.err (!%p389_p9)
}
 0x167   :  { %284 = dma.vmem_to_hbm [thread:$0]  %s282_s17, 128, %s488_s4, [#allocation7]  }
 0x168   :  { %397 = dma.done.wait [#allocation7], 128  }
 0x169   :  { %398 = vsyncadd [#allocation7], 4294967168 }
 0x16a   :  { %288 = vsyncpa [#allocation6], 1 }
 0x16b   :  { %289 = vsyncpa [#allocation9], 1 }
 0x16c   :  { %290 = vsyncpa [#allocation7], 1 }

</bundles_post_ra>
